<compile_context>
chip_gen: v7x
topology: tpu7x:2x2x1
jax: 0.10.0
libtpu: 0.0.40
codegen_flags: <defaults>
</compile_context>

<pallas_src>
import jax
import jax.numpy as jnp
from jax import lax
from jax.experimental import pallas as pl
from jax.experimental.pallas import tpu as pltpu


def _round_up(x, m):
    return (x + m - 1) // m * m


def cbow_kernel(idx_ref, fused_ref, b1_ref, w2_ref, b2_ref, o_ref):
    """One batch tile per grid step.

    idx_ref   : (TM, C)      int32  context word ids for this batch tile
    fused_ref : (C*Vt, H)    bf16   embedding table pre-contracted with linear1 (VMEM resident)
    b1_ref    : (1, H)       f32
    w2_ref    : (H, Vp)      bf16   linear2 weight, vocab padded to lane width (resident)
    b2_ref    : (1, Vp)      f32    padded lanes carry -1e30 (bakes the vocab mask into the bias)
    o_ref     : (TM, Vp)     f32    log-probabilities (padded lanes sliced off outside)
    """
    idx = idx_ref[...]                                   # (TM, C) int32
    tm, ctx = idx.shape
    vt = fused_ref.shape[0] // ctx

    # Single iota, reused for all context positions (broadcast_in_dim is not CSE'd by JAX).
    iota = lax.broadcasted_iota(jnp.int32, (tm, vt), 1)
    onehot = jnp.concatenate(
        [(idx[:, c:c + 1] == iota).astype(jnp.bfloat16) for c in range(ctx)],
        axis=1)                                          # (TM, C*Vt), 128-aligned lane chunks

    # Fused (embedding gather o linear1): one MXU pass, K = C*Vt, N = H, f32 accumulation.
    acc = jnp.dot(onehot, fused_ref[...], preferred_element_type=jnp.float32)   # (TM, H)

    # linear1 bias + ReLU (f32)
    h = jnp.maximum(acc + b1_ref[...], 0.0)

    # linear2 (bf16 operands, f32 accumulation). Padded vocab lanes pick up the -1e30 bias,
    # so exp() underflows to 0 below and no explicit mask is needed.
    logits = jnp.dot(h.astype(jnp.bfloat16), w2_ref[...],
                     preferred_element_type=jnp.float32) + b2_ref[...]          # (TM, Vp)

    # log_softmax over the vocab axis (dim=1), f32.
    m = jnp.max(logits, axis=-1, keepdims=True)
    shifted = logits - m
    lse = jnp.log(jnp.sum(jnp.exp(shifted), axis=-1, keepdims=True))
    o_ref[...] = shifted - lse


def cbow_forward(inputs, embedding_table, w1, b1, w2, b2):
    """inputs: (B, C) int32; w1: (C*E, H); w2: (H, V). Returns (B, V) f32 log-probs."""
    B, C = inputs.shape
    V, E = embedding_table.shape
    H = w1.shape[1]

    b1 = jnp.asarray(b1, jnp.float32).reshape(1, H)
    b2 = jnp.asarray(b2, jnp.float32).reshape(1, V)

    # ---- lane / MXU friendly padding ----------------------------------------------------
    Vt = _round_up(V, 128)          # one-hot contraction dim (per-context chunk of fused K)
    Vp = _round_up(V, 128)          # output vocab lanes (linear2 columns)

    # Batch tile: prefer the full 256 MXU rows (v6e/v7x) when that still leaves >=2 tiles for
    # v7x's two TensorCores; otherwise 128; otherwise split the batch in two; tiny batches just
    # round up to the sublane quantum.
    if B >= 512:
        TM = 256
    elif B >= 256:
        TM = 128
    elif B >= 16:
        TM = _round_up(pl.cdiv(B, 2), 8)
    else:
        TM = _round_up(max(B, 1), 8)
    Bp = _round_up(B, TM)
    n_tiles = Bp // TM

    # ---- wrapper-side weight prep --------------------------------------------------------
    idx_p = jnp.zeros((Bp, C), jnp.int32).at[:B].set(inputs.astype(jnp.int32))

    # Fold the embedding table into linear1:  fused[c*Vt + v, h] = sum_e table[v,e] * w1[c,e,h].
    tab_p = jnp.zeros((Vt, E), jnp.float32).at[:V].set(
        jnp.asarray(embedding_table, jnp.float32))
    w1_r = jnp.asarray(w1, jnp.float32).reshape(C, E, H)
    fused = jnp.einsum("ve,ceh->cvh", tab_p, w1_r).reshape(C * Vt, H).astype(jnp.bfloat16)

    w2_p = (jnp.zeros((H, Vp), jnp.float32).at[:, :V].set(jnp.asarray(w2, jnp.float32))
            ).astype(jnp.bfloat16)
    # Bake the vocab-padding mask into the bias: padded lanes -> -1e30.
    b2_p = jnp.full((1, Vp), -1e30, jnp.float32).at[:, :V].set(b2)

    # ---- cost / VMEM hints ----------------------------------------------------------------
    weight_bytes = (C * Vt * H * 2) + (H * Vp * 2) + (H * 4) + (Vp * 4)
    tile_bytes = (TM * C * 4) + (TM * Vp * 4)
    # Resident weights and pipelined tiles are double-buffered by the BlockSpec pipeline.
    vmem_need = 2 * (weight_bytes + tile_bytes)
    vmem_limit = int(min(max(32 * 2**20, 2 * vmem_need), 64 * 2**20))

    cost = pl.CostEstimate(
        flops=2 * Bp * (C * Vt * H + H * Vp),
        transcendentals=Bp * Vp,
        bytes_accessed=Bp * C * 4 + weight_bytes + Bp * Vp * 4,
    )

    out = pl.pallas_call(
        cbow_kernel,
        out_shape=jax.ShapeDtypeStruct((Bp, Vp), jnp.float32),
        grid=(n_tiles,),
        in_specs=[
            pl.BlockSpec((TM, C), lambda i: (i, 0)),          # idx: tiled over batch
            pl.BlockSpec((C * Vt, H), lambda i: (0, 0)),      # fused table@w1: resident
            pl.BlockSpec((1, H), lambda i: (0, 0)),           # b1: resident
            pl.BlockSpec((H, Vp), lambda i: (0, 0)),          # w2: resident
            pl.BlockSpec((1, Vp), lambda i: (0, 0)),          # b2 (mask baked in): resident
        ],
        out_specs=pl.BlockSpec((TM, Vp), lambda i: (i, 0)),
        compiler_params=pltpu.CompilerParams(
            dimension_semantics=("parallel",),                # shards batch tiles on v7x's 2 TCs
            vmem_limit_bytes=vmem_limit,
        ),
        cost_estimate=cost,
    )(idx_p, fused, b1, w2_p, b2_p)

    return out[:B, :V]


def reference_forward(inputs, embedding_table, w1, b1, w2, b2):
    """Pure-f32 reference matching the PyTorch module's forward semantics."""
    B = inputs.shape[0]
    embeds = embedding_table[inputs].reshape(B, -1)
    h = jnp.maximum(jnp.dot(embeds, jnp.asarray(w1)) + jnp.asarray(b1).reshape(1, -1), 0.0)
    logits = jnp.dot(h, jnp.asarray(w2)) + jnp.asarray(b2).reshape(1, -1)
    return jax.nn.log_softmax(logits, axis=1)


if __name__ == "__main__":
    # Small, module-consistent shapes
    vocab_size = 50
    embedding_dim = 16
    context_size = 4
    batch = 8
    hidden = 128  # fixed by the module (linear1 out features)

    key = jax.random.PRNGKey(0)
    k_emb, k_w1, k_b1, k_w2, k_b2, k_in = jax.random.split(key, 6)

    # Deterministic parameter init (nn.Embedding ~ N(0,1); nn.Linear ~ U(-1/sqrt(fan_in), ...))
    embedding_table = jax.random.normal(k_emb, (vocab_size, embedding_dim), jnp.float32)

    in1 = context_size * embedding_dim
    lim1 = 1.0 / jnp.sqrt(in1)
    w1 = jax.random.uniform(k_w1, (in1, hidden), jnp.float32, -lim1, lim1)
    b1 = jax.random.uniform(k_b1, (1, hidden), jnp.float32, -lim1, lim1)

    lim2 = 1.0 / jnp.sqrt(hidden)
    w2 = jax.random.uniform(k_w2, (hidden, vocab_size), jnp.float32, -lim2, lim2)
    b2 = jax.random.uniform(k_b2, (1, vocab_size), jnp.float32, -lim2, lim2)

    inputs = jax.random.randint(k_in, (batch, context_size), 0, vocab_size, jnp.int32)

    log_probs = cbow_forward(inputs, embedding_table, w1, b1, w2, b2)
    log_probs = jax.block_until_ready(log_probs)

    ref = reference_forward(inputs, embedding_table, w1, b1, w2, b2)
    assert log_probs.shape == (batch, vocab_size)
    # Kernel runs its matmuls in bf16 (f32 accumulation); reference is pure f32, so allow
    # bf16-level tolerance on the log-probs.
    max_err = float(jnp.max(jnp.abs(log_probs - ref)))
    assert jnp.allclose(log_probs, ref, atol=2e-2, rtol=2e-3), max_err

    print("KERNEL_OK")
</pallas_src>

<mosaic_0001>
module attributes {stable_mosaic.version = 11 : i64} {
  func.func @cbow_kernel(%arg0: i32, %arg1: memref<8x4xi32, #tpu.memory_space<vmem>>, %arg2: memref<512x128xbf16, #tpu.memory_space<vmem>>, %arg3: memref<1x128xf32, #tpu.memory_space<vmem>>, %arg4: memref<128x128xbf16, #tpu.memory_space<vmem>>, %arg5: memref<1x128xf32, #tpu.memory_space<vmem>>, %arg6: memref<8x128xf32, #tpu.memory_space<vmem>>) attributes {dimension_semantics = [#tpu.dimension_semantics<parallel>], iteration_bounds = array<i64: 1>, scalar_prefetch = 0 : i64, scratch_operands = 0 : i64, tpu.core_type = #tpu.core_type<tc>, window_params = [{transform_indices = @transform_0, window_bounds = array<i64: 8, 4>}, {pipeline_mode = #tpu.pipeline_mode<synchronous>, transform_indices = @transform_1, window_bounds = array<i64: 512, 128>}, {pipeline_mode = #tpu.pipeline_mode<synchronous>, transform_indices = @transform_2, window_bounds = array<i64: 1, 128>}, {pipeline_mode = #tpu.pipeline_mode<synchronous>, transform_indices = @transform_3, window_bounds = array<i64: 128, 128>}, {pipeline_mode = #tpu.pipeline_mode<synchronous>, transform_indices = @transform_4, window_bounds = array<i64: 1, 128>}, {transform_indices = @transform_5, window_bounds = array<i64: 8, 128>}]} {
    %c0 = arith.constant 0 : index
    %c0_0 = arith.constant 0 : index
    %0 = vector.load %arg1[%c0, %c0_0] : memref<8x4xi32, #tpu.memory_space<vmem>>, vector<8x4xi32>
    %1 = tpu.iota {dimensions = array<i32: 1>} : vector<8x128xi32>
    %2 = vector.extract_strided_slice %0 {offsets = [0, 0], sizes = [8, 1], strides = [1, 1]} : vector<8x4xi32> to vector<8x1xi32>
    %3 = vector.broadcast %2 : vector<8x1xi32> to vector<8x128xi32>
    %4 = arith.cmpi eq, %3, %1 : vector<8x128xi32>
    %5 = arith.extui %4 : vector<8x128xi1> to vector<8x128xi32>
    %6 = arith.sitofp %5 : vector<8x128xi32> to vector<8x128xf32>
    %7 = arith.truncf %6 : vector<8x128xf32> to vector<8x128xbf16>
    %8 = vector.extract_strided_slice %0 {offsets = [0, 1], sizes = [8, 1], strides = [1, 1]} : vector<8x4xi32> to vector<8x1xi32>
    %9 = vector.broadcast %8 : vector<8x1xi32> to vector<8x128xi32>
    %10 = arith.cmpi eq, %9, %1 : vector<8x128xi32>
    %11 = arith.extui %10 : vector<8x128xi1> to vector<8x128xi32>
    %12 = arith.sitofp %11 : vector<8x128xi32> to vector<8x128xf32>
    %13 = arith.truncf %12 : vector<8x128xf32> to vector<8x128xbf16>
    %14 = vector.extract_strided_slice %0 {offsets = [0, 2], sizes = [8, 1], strides = [1, 1]} : vector<8x4xi32> to vector<8x1xi32>
    %15 = vector.broadcast %14 : vector<8x1xi32> to vector<8x128xi32>
    %16 = arith.cmpi eq, %15, %1 : vector<8x128xi32>
    %17 = arith.extui %16 : vector<8x128xi1> to vector<8x128xi32>
    %18 = arith.sitofp %17 : vector<8x128xi32> to vector<8x128xf32>
    %19 = arith.truncf %18 : vector<8x128xf32> to vector<8x128xbf16>
    %20 = vector.extract_strided_slice %0 {offsets = [0, 3], sizes = [8, 1], strides = [1, 1]} : vector<8x4xi32> to vector<8x1xi32>
    %21 = vector.broadcast %20 : vector<8x1xi32> to vector<8x128xi32>
    %22 = arith.cmpi eq, %21, %1 : vector<8x128xi32>
    %23 = arith.extui %22 : vector<8x128xi1> to vector<8x128xi32>
    %24 = arith.sitofp %23 : vector<8x128xi32> to vector<8x128xf32>
    %25 = arith.truncf %24 : vector<8x128xf32> to vector<8x128xbf16>
    %26 = tpu.concatenate %7, %13, %19, %25 in 1 : vector<8x128xbf16>, vector<8x128xbf16>, vector<8x128xbf16>, vector<8x128xbf16> -> vector<8x512xbf16>
    %c0_1 = arith.constant 0 : index
    %c0_2 = arith.constant 0 : index
    %27 = vector.load %arg2[%c0_1, %c0_2] : memref<512x128xbf16, #tpu.memory_space<vmem>>, vector<512x128xbf16>
    %cst = arith.constant dense<0.000000e+00> : vector<8x128xf32>
    %28 = tpu.matmul %26, %27, %cst {dimension_numbers = #tpu.dot_dimension_numbers<[1], [0], [0], [1], [0, 0, 1, 1], [], []>} : vector<8x512xbf16>, vector<512x128xbf16>, vector<8x128xf32> -> vector<8x128xf32>
    %c0_3 = arith.constant 0 : index
    %c0_4 = arith.constant 0 : index
    %29 = vector.load %arg3[%c0_3, %c0_4] : memref<1x128xf32, #tpu.memory_space<vmem>>, vector<1x128xf32>
    %30 = vector.broadcast %29 : vector<1x128xf32> to vector<8x128xf32>
    %31 = arith.addf %28, %30 : vector<8x128xf32>
    %cst_5 = arith.constant 0.000000e+00 : f32
    %32 = vector.broadcast %cst_5 : f32 to vector<8x128xf32>
    %33 = arith.maximumf %31, %32 : vector<8x128xf32>
    %34 = arith.truncf %33 : vector<8x128xf32> to vector<8x128xbf16>
    %c0_6 = arith.constant 0 : index
    %c0_7 = arith.constant 0 : index
    %35 = vector.load %arg4[%c0_6, %c0_7] : memref<128x128xbf16, #tpu.memory_space<vmem>>, vector<128x128xbf16>
    %cst_8 = arith.constant dense<0.000000e+00> : vector<8x128xf32>
    %36 = tpu.matmul %34, %35, %cst_8 {dimension_numbers = #tpu.dot_dimension_numbers<[1], [0], [0], [1], [0, 0, 1, 1], [], []>} : vector<8x128xbf16>, vector<128x128xbf16>, vector<8x128xf32> -> vector<8x128xf32>
    %c0_9 = arith.constant 0 : index
    %c0_10 = arith.constant 0 : index
    %37 = vector.load %arg5[%c0_9, %c0_10] : memref<1x128xf32, #tpu.memory_space<vmem>>, vector<1x128xf32>
    %38 = vector.broadcast %37 : vector<1x128xf32> to vector<8x128xf32>
    %39 = arith.addf %36, %38 : vector<8x128xf32>
    %cst_11 = arith.constant dense<0xFF800000> : vector<8xf32>
    %40 = vector.multi_reduction <maximumf>, %39, %cst_11 [1] : vector<8x128xf32> to vector<8xf32>
    %41 = vector.shape_cast %40 : vector<8xf32> to vector<8x1xf32>
    %42 = vector.broadcast %41 : vector<8x1xf32> to vector<8x128xf32>
    %43 = arith.subf %39, %42 : vector<8x128xf32>
    %44 = math.exp %43 : vector<8x128xf32>
    %cst_12 = arith.constant dense<0.000000e+00> : vector<8xf32>
    %45 = vector.multi_reduction <add>, %44, %cst_12 [1] : vector<8x128xf32> to vector<8xf32>
    %46 = vector.shape_cast %45 : vector<8xf32> to vector<8x1xf32>
    %47 = math.log %46 : vector<8x1xf32>
    %48 = vector.broadcast %47 : vector<8x1xf32> to vector<8x128xf32>
    %49 = arith.subf %43, %48 : vector<8x128xf32>
    %c0_13 = arith.constant 0 : index
    %c0_14 = arith.constant 0 : index
    %50 = vector.load %arg6[%c0_13, %c0_14] : memref<8x128xf32, #tpu.memory_space<vmem>>, vector<8x128xf32>
    tpu.vector_store %arg6[%c0_13, %c0_14], %49 {strides = array<i32>} : memref<8x128xf32, #tpu.memory_space<vmem>>, vector<8x128xf32>,
    return
  }
  func.func @transform_0(%arg0: i32) -> (i32, i32) {
    %c0_i32 = arith.constant 0 : i32
    %c0_i32_0 = arith.constant 0 : i32
    return %arg0, %c0_i32 : i32, i32
  }
  func.func @transform_1(%arg0: i32) -> (i32, i32) {
    %c0_i32 = arith.constant 0 : i32
    %c0_i32_0 = arith.constant 0 : i32
    %c0_i32_1 = arith.constant 0 : i32
    return %c0_i32, %c0_i32_0 : i32, i32
  }
  func.func @transform_2(%arg0: i32) -> (i32, i32) {
    %c0_i32 = arith.constant 0 : i32
    %c0_i32_0 = arith.constant 0 : i32
    %c0_i32_1 = arith.constant 0 : i32
    return %c0_i32, %c0_i32_0 : i32, i32
  }
  func.func @transform_3(%arg0: i32) -> (i32, i32) {
    %c0_i32 = arith.constant 0 : i32
    %c0_i32_0 = arith.constant 0 : i32
    %c0_i32_1 = arith.constant 0 : i32
    return %c0_i32, %c0_i32_0 : i32, i32
  }
  func.func @transform_4(%arg0: i32) -> (i32, i32) {
    %c0_i32 = arith.constant 0 : i32
    %c0_i32_0 = arith.constant 0 : i32
    %c0_i32_1 = arith.constant 0 : i32
    return %c0_i32, %c0_i32_0 : i32, i32
  }
  func.func @transform_5(%arg0: i32) -> (i32, i32) {
    %c0_i32 = arith.constant 0 : i32
    %c0_i32_0 = arith.constant 0 : i32
    return %arg0, %c0_i32 : i32, i32
  }
}

</mosaic_0001>

<bundles_post_ra>
// kernel: tpu_custom_call.1
= control target key start
LH: loop header
LB: loop body
LE: loop exit
PB: predicated region body
PF: predicated region fallthrough
CT: control target
= control target key end

     0   :  { %10 = vsyncpa [#allocation3], 0  ;;  %s911_s0 = inlined_call_operand.vmem [shape: s32[8,4], index: 0, kind: input, shape index: {}]   ;;  %s912_s1 = inlined_call_operand.hbm [shape: bf16[512,128], index: 1, kind: input, shape index: {}]   ;;  %s913_s2 = inlined_call_operand.vmem [shape: f32[1,128], index: 2, kind: input, shape index: {}]   ;;  %s914_s3 = inlined_call_operand.hbm [shape: bf16[128,128], index: 3, kind: input, shape index: {}]   ;;  %s915_s4 = inlined_call_operand.vmem [shape: f32[1,128], index: 4, kind: input, shape index: {}]   ;;  %s916_s5 = inlined_call_operand.hbm [shape: f32[8,128], index: 5, kind: output, shape index: {}]  }
   0x1   :  { %11 = vsyncpa [#allocation6], 0 }
   0x2   :  { %12 = vsyncpa [#allocation4], 0  ;;  %s824_s18 = smov [#allocation2]   ;;  %s752_s22 = scalar_lea.hbm %s912_s1, 4096 }
   0x3   :  { %s20_s19 = sshll.u32 %s824_s18, 4  ;;  %p753_p0 = scmp.ne.s32.totalorder %s912_s1, %s752_s22  ;;  %s21_s19 = int_to_ptr.vmem [resolvable:$true] %s20_s19 }
   0x4   :  { %p756_p1 = scmp.lt.u32.totalorder %s752_s22, %s912_s1 }
   0x6   :  { %p758_p2 = pnand %p756_p1, %p753_p0 }
   0x8   :  { %761 = shalt.err (!%p758_p2)
}
   0x9   :  { %s762_s27 = scalar_lea.vmem %s21_s19, 4096  ;;  %p767_p4 = scmp.lt.s32.totalorder %s21_s19, %s21_s19 }
   0xa   :  { %p763_p3 = scmp.ne.s32.totalorder %s21_s19, %s762_s27  ;;  %p768_p5 = scmp.lt.s32.totalorder %s762_s27, %s762_s27 }
   0xc   :  { %p769_p6 = por %p768_p5, %p767_p4 }
   0xe   :  { %p770_p7 = pnand %p769_p6, %p763_p3 }
  0x10   :  { %773 = shalt.err (!%p770_p7)
}
  0x11   :  { %s825_s28 = smov 64   ;;  %s826_s29 = smov 4  }
  0x12   :  { %26 = dma.hbm_to_vmem [thread:$0]  %s912_s1, 4096, %s21_s19, [#allocation3], %s825_s28, %s825_s28, %s826_s29  }
  0x13   :  { %s827_s7 = smov [#allocation5]   ;;  %s774_s11 = scalar_lea.hbm %s914_s3, 1024 }
  0x14   :  { %s34_s8 = sshll.u32 %s827_s7, 4  ;;  %p775_p8 = scmp.ne.s32.totalorder %s914_s3, %s774_s11  ;;  %s35_s8 = int_to_ptr.vmem [resolvable:$true] %s34_s8 }
  0x15   :  { %p778_p9 = scmp.lt.u32.totalorder %s774_s11, %s914_s3 }
  0x17   :  { %p780_p10 = pnand %p778_p9, %p775_p8 }
  0x19   :  { %783 = shalt.err (!%p780_p10)
}
  0x1a   :  { %s784_s16 = scalar_lea.vmem %s35_s8, 1024  ;;  %p789_p12 = scmp.lt.s32.totalorder %s35_s8, %s35_s8 }
  0x1b   :  { %p785_p11 = scmp.ne.s32.totalorder %s35_s8, %s784_s16  ;;  %p790_p13 = scmp.lt.s32.totalorder %s784_s16, %s784_s16 }
  0x1d   :  { %p791_p0 = por %p790_p13, %p789_p12 }
  0x1f   :  { %p792_p1 = pnand %p791_p0, %p785_p11 }
  0x21   :  { %795 = shalt.err (!%p792_p1)
}
  0x22   :  { %40 = dma.hbm_to_vmem [thread:$0]  %s914_s3, 1024, %s35_s8, [#allocation6], %s825_s28, %s825_s28, %s826_s29  }
  0x23   :  { %818 = dma.done.wait [#allocation3], 4096  }
  0x24   :  { %819 = vsyncadd [#allocation3], 4294963200 }
  0x25   :  { %820 = dma.done.wait [#allocation6], 1024  }
  0x26   :  { %821 = vsyncadd [#allocation6], 4294966272  ;;  %v828_v0 = vmov 3   ;;  %v829_v1 = vmov 1   ;;  %v50_v2 = vld [vmem:[%s911_s0] sm:$0xff]  ;;  %v830_v7 = vmov 2   ;;  %v51_v38 = vlaneseq }
  0x27   :  { %705 = vset.pattern.permute.xlu1 %v828_v0  ;;  %703 = vset.pattern.permute.xlu0 %v829_v1  ;;  %v708_v3 = vld [vmem:[#allocation2 + $0x40] sm:$0xff]   ;;  %v831_v8 = vmov 0   ;;  %v712_v9 = vld [vmem:[#allocation2 + $0x48] sm:$0xff]   ;;  %v716_v13 = vld [vmem:[#allocation2 + $0x50] sm:$0xff]   ;;  %v832_v37 = vmov 0.0   ;;  %vm834_vm8 = vmmov 0  }
  0x28   :  { %75 = vperm.xlu1 %705, %v50_v2   ;;  %61 = vperm.xlu0 %703, %v50_v2   ;;  %v709_v4 = vld [vmem:[#allocation2 + $0xc0] sm:$0xff]   ;;  %v713_v10 = vld [vmem:[#allocation2 + $0xc8] sm:$0xff]   ;;  %v717_v14 = vld [vmem:[#allocation2 + $0xd0] sm:$0xff]   ;;  %v52_v39 = vand.u32 127, %v51_v38  ;;  %v833_v42 = vmov 1.0|1.0  }
  0x29   :  { %618 = vmatprep.subr.bf16.mxu0 %v708_v3  ;;  %v710_v5 = vld [vmem:[#allocation2] sm:$0xff]   ;;  %640 = vmatprep.subr.bf16.mxu1 %v709_v4  ;;  %v714_v11 = vld [vmem:[#allocation2 + $0x8] sm:$0xff]   ;;  %v718_v15 = vld [vmem:[#allocation2 + $0x10] sm:$0xff]  }
  0x2a   :  { %v711_v6 = vld [vmem:[#allocation2 + $0x80] sm:$0xff]   ;;  %619 = vmatpush3.bf16.msra.mxu0 %v710_v5  ;;  %v715_v12 = vld [vmem:[#allocation2 + $0x88] sm:$0xff]   ;;  %v719_v16 = vld [vmem:[#allocation2 + $0x90] sm:$0xff]  }
  0x2b   :  { %641 = vmatpush3.bf16.msra.mxu1 %v711_v6  ;;  %620 = vmatprep.subr.bf16.mxu0 %v712_v9  ;;  %v720_v17 = vld [vmem:[#allocation2 + $0x58] sm:$0xff]   ;;  %v724_v21 = vld [vmem:[#allocation2 + $0x60] sm:$0xff]   ;;  %v728_v25 = vld [vmem:[#allocation2 + $0x68] sm:$0xff]  }
  0x2c   :  { %706 = vset.pattern.permute.xlu1 %v830_v7  ;;  %704 = vset.pattern.permute.xlu0 %v831_v8  ;;  %v721_v18 = vld [vmem:[#allocation2 + $0xd8] sm:$0xff]   ;;  %v725_v22 = vld [vmem:[#allocation2 + $0xe0] sm:$0xff]   ;;  %v729_v26 = vld [vmem:[#allocation2 + $0xe8] sm:$0xff]  }
  0x2d   :  { %68 = vperm.xlu1 %706, %v50_v2   ;;  %54 = vperm.xlu0 %704, %v50_v2   ;;  %v722_v19 = vld [vmem:[#allocation2 + $0x18] sm:$0xff]   ;;  %v726_v23 = vld [vmem:[#allocation2 + $0x20] sm:$0xff]   ;;  %v730_v27 = vld [vmem:[#allocation2 + $0x28] sm:$0xff]  }
  0x2e   :  { %642 = vmatprep.subr.bf16.mxu1 %v713_v10  ;;  %621 = vmatpush3.bf16.msra.mxu0 %v714_v11  ;;  %v723_v20 = vld [vmem:[#allocation2 + $0x98] sm:$0xff]   ;;  %v727_v24 = vld [vmem:[#allocation2 + $0xa0] sm:$0xff]   ;;  %v731_v28 = vld [vmem:[#allocation2 + $0xa8] sm:$0xff]  }
  0x2f   :  { %643 = vmatpush3.bf16.msra.mxu1 %v715_v12  ;;  %622 = vmatprep.subr.bf16.mxu0 %v716_v13  ;;  %v732_v29 = vld [vmem:[#allocation2 + $0x70] sm:$0xff]   ;;  %v736_v33 = vld [vmem:[#allocation2 + $0x78] sm:$0xff]   ;;  %v740_v45 = vld [vmem:[#allocation5] sm:$0xff]  }
  0x30   :  { %644 = vmatprep.subr.bf16.mxu1 %v717_v14  ;;  %v733_v30 = vld [vmem:[#allocation2 + $0xf0] sm:$0xff]   ;;  %v737_v34 = vld [vmem:[#allocation2 + $0xf8] sm:$0xff]   ;;  %v741_v46 = vld [vmem:[#allocation5 + $0x8] sm:$0xff]  }
  0x31   :  { %707 = vset.pattern.permute.xlu0 %v828_v0  ;;  %v734_v31 = vld [vmem:[#allocation2 + $0x30] sm:$0xff]   ;;  %v738_v35 = vld [vmem:[#allocation2 + $0x38] sm:$0xff]   ;;  %v744_v49 = vld [vmem:[#allocation5 + $0x20] sm:$0xff]  }
  0x32   :  { %623 = vmatpush3.bf16.msra.mxu0 %v718_v15  ;;  %v735_v32 = vld [vmem:[#allocation2 + $0xb0] sm:$0xff]   ;;  %v739_v36 = vld [vmem:[#allocation2 + $0xb8] sm:$0xff]   ;;  %v745_v50 = vld [vmem:[#allocation5 + $0x28] sm:$0xff]  }
  0x33   :  { %645 = vmatpush3.bf16.msra.mxu1 %v719_v16  ;;  %624 = vmatprep.subr.bf16.mxu0 %v720_v17  ;;  %v742_v47 = vld [vmem:[#allocation5 + $0x10] sm:$0xff]   ;;  %v743_v48 = vld [vmem:[#allocation5 + $0x18] sm:$0xff]   ;;  %v568_v56 = vld [vmem:[%s913_s2] ss:$0 sm:$0xff]  ;;  %s835_s2 = smov [#allocation7]  }
  0x34   :  { %646 = vmatprep.subr.bf16.mxu1 %v721_v18  ;;  %v746_v51 = vld [vmem:[#allocation5 + $0x30] sm:$0xff]   ;;  %v747_v52 = vld [vmem:[#allocation5 + $0x38] sm:$0xff]   ;;  %v609_v4 = vld [vmem:[%s915_s4] ss:$0 sm:$0xff]  ;;  %s554_s22 = sshll.u32 %s835_s2, 4  ;;  %s555_s22 = int_to_ptr.vmem [resolvable:$true] %s554_s22 }
  0x35   :  { %s796_s4 = scalar_lea.vmem %s555_s22, 128  ;;  %p801_p3 = scmp.lt.s32.totalorder %s555_s22, %s555_s22 }
  0x36   :  { %625 = vmatpush3.bf16.msra.mxu0 %v722_v19  ;;  %p797_p2 = scmp.ne.s32.totalorder %s555_s22, %s796_s4  ;;  %p802_p4 = scmp.lt.s32.totalorder %s796_s4, %s796_s4 }
  0x37   :  { %647 = vmatpush3.bf16.msra.mxu1 %v723_v20  ;;  %626 = vmatprep.subr.bf16.mxu0 %v724_v21 }
  0x38   :  { %648 = vmatprep.subr.bf16.mxu1 %v725_v22  ;;  %p803_p5 = por %p802_p4, %p801_p3 }
  0x3a   :  { %627 = vmatpush3.bf16.msra.mxu0 %v726_v23  ;;  %p804_p6 = pnand %p803_p5, %p797_p2 }
  0x3b   :  { %649 = vmatpush3.bf16.msra.mxu1 %v727_v24  ;;  %628 = vmatprep.subr.bf16.mxu0 %v728_v25 }
  0x3c   :  { %650 = vmatprep.subr.bf16.mxu1 %v729_v26 }
  0x3e   :  { %629 = vmatpush3.bf16.msra.mxu0 %v730_v27 }
  0x3f   :  { %651 = vmatpush3.bf16.msra.mxu1 %v731_v28  ;;  %630 = vmatprep.subr.bf16.mxu0 %v732_v29 }
  0x40   :  { %652 = vmatprep.subr.bf16.mxu1 %v733_v30 }
  0x42   :  { %631 = vmatpush3.bf16.msra.mxu0 %v734_v31 }
  0x43   :  { %653 = vmatpush3.bf16.msra.mxu1 %v735_v32  ;;  %632 = vmatprep.subr.bf16.mxu0 %v736_v33 }
  0x44   :  { %654 = vmatprep.subr.bf16.mxu1 %v737_v34 }
  0x46   :  { %633 = vmatpush3.bf16.msra.mxu0 %v738_v35 }
  0x47   :  { %655 = vmatpush3.bf16.msra.mxu1 %v739_v36  ;;  %671 = vmatprep.subr.bf16.mxu0 %v832_v37 }
  0xa7   :  { %v62_v40 = vpop.permute.xlu0 %61  ;;  %v76_v41 = vpop.permute.xlu1 %75 }
  0xa8   :  { %vm63_vm0 = vcmp.eq.s32.totalorder %v62_v40, %v52_v39  ;;  %vm77_vm1 = vcmp.eq.s32.totalorder %v76_v41, %v52_v39 }
  0xa9   :  { %vm601_vm2 = vmpackc.low %vm63_vm0, %vm63_vm0 }
  0xaa   :  { %602 = vmatprep.mubr.msk.bf16.mxu0 %vm601_vm2, %v833_v42  ;;  %vm605_vm3 = vmpackc.low %vm77_vm1, %vm77_vm1 }
  0xab   :  { %606 = vmatprep.mubr.msk.bf16.mxu1 %vm605_vm3, %v833_v42 }
  0xac   :  { %v69_v43 = vpop.permute.xlu1 %68  ;;  %v55_v44 = vpop.permute.xlu0 %54 }
  0xad   :  { %vm70_vm4 = vcmp.eq.s32.totalorder %v69_v43, %v52_v39  ;;  %vm56_vm5 = vcmp.eq.s32.totalorder %v55_v44, %v52_v39 }
  0xae   :  { %vm607_vm6 = vmpackc.low %vm70_vm4, %vm70_vm4 }
  0xaf   :  { %vm603_vm7 = vmpackc.low %vm56_vm5, %vm56_vm5  ;;  %608 = vmatmul.mubr.msk.bf16.vlgmr.msra.gmra.mrb[0].mxu1 %vm607_vm6, %v833_v42 }
  0xb0   :  { %604 = vmatmul.mubr.msk.bf16.vlgmr.msra.gmra.mrb[0].mxu0 %vm603_vm7, %v833_v42 }
  0xb1   :  { %672 = vmatpush3.bf16.msra.mxu0 %v740_v45  ;;  %687 = vmatprep.mubr.msk.bf16.mxu0 %vm834_vm8, %v832_v37 }
  0xb2   :  { %673 = vmatprep.subr.bf16.mxu0 %v832_v37 }
  0xb5   :  { %674 = vmatpush3.bf16.msra.mxu0 %v741_v46 }
  0xb6   :  { %675 = vmatprep.subr.bf16.mxu0 %v832_v37 }
  0xb9   :  { %676 = vmatpush3.bf16.msra.mxu0 %v742_v47 }
  0xba   :  { %677 = vmatprep.subr.bf16.mxu0 %v832_v37 }
  0xbd   :  { %678 = vmatpush3.bf16.msra.mxu0 %v743_v48 }
  0xbe   :  { %679 = vmatprep.subr.bf16.mxu0 %v832_v37 }
  0xc1   :  { %680 = vmatpush3.bf16.msra.mxu0 %v744_v49 }
  0xc2   :  { %681 = vmatprep.subr.bf16.mxu0 %v832_v37 }
  0xc5   :  { %682 = vmatpush3.bf16.msra.mxu0 %v745_v50 }
  0xc6   :  { %683 = vmatprep.subr.bf16.mxu0 %v832_v37 }
  0xc9   :  { %684 = vmatpush3.bf16.msra.mxu0 %v746_v51 }
  0xca   :  { %685 = vmatprep.subr.bf16.mxu0 %v832_v37 }
  0xcd   :  { %686 = vmatpush3.bf16.msra.mxu0 %v747_v52 }
 0x182   :  { %v656_v53 = vpop.f32.mrb[0].mxu1 }
 0x183   :  { %v634_v54 = vpop.f32.mrb[0].mxu0  ;;  %v657_v55 = vpop.f32.mrb[1].mxu1 }
 0x184   :  { %v635_v57 = vpop.f32.mrb[1].mxu0  ;;  %v658_v58 = vadd.f32 %v657_v55, %v656_v53  ;;  %v659_v59 = vpop.f32.mrb[2].mxu1 }
 0x185   :  { %v636_v60 = vadd.f32 %v635_v57, %v634_v54  ;;  %v637_v61 = vpop.f32.mrb[2].mxu0  ;;  %v660_v62 = vpop.f32.mrb[3].mxu1 }
 0x186   :  { %v638_v63 = vpop.f32.mrb[3].mxu0 }
 0x187   :  { %v379_v0 = vadd.f32 %v636_v60, %v568_v56 }
 0x189   :  { %v419_v1 = vadd.f32 %v658_v58, %v379_v0 }
 0x18b   :  { %v424_v2 = vmax.f32 %v419_v1, 0.0 }
 0x18d   :  { %v425_v3 = vpack.c.bf16 %v424_v2, %v424_v2 }
 0x18f   :  { %688 = vmatmul.mubr.bf16.vlgmr.msra.gmra.mrb[4].mxu0 %v425_v3 }
 0x262   :  { %v531_v5 = vpop.f32.mrb[4].mxu0 }
 0x263   :  { %v532_v6 = vadd.f32 %v609_v4, %v531_v5  ;;  %v689_v7 = vpop.f32.mrb[5].mxu0 }
 0x264   :  { %v534_v8 = vpop.f32.mrb[6].mxu0 }
 0x265   :  { %537 = vmax.xlane.f32.xlu1 %v532_v6  ;;  %v690_v9 = vpop.f32.mrb[7].mxu0 }
 0x2f2   :  { %v538_v10 = vpop.xlane.xlu1 %537 }
 0x2f3   :  { %v539_v11 = vsub.f32 %v532_v6, %v538_v10 }
 0x2f5   :  { %v540_v12 = vmul.f32 1.442695, %v539_v11 }
 0x2f7   :  { %748 = vpow2.f32 %v540_v12 }
 0x301   :  { %v749_v13 = vpop.eup %748 }
 0x302   :  { %542 = vadd.xlane.f32.xlu0 %v749_v13 }
 0x38f   :  { %v543_v14 = vpop.xlane.xlu0 %542 }
 0x390   :  { %750 = vlog2.f32 %v543_v14 }
 0x39a   :  { %v751_v15 = vpop.eup %750 }
 0x39b   :  { %v545_v16 = vmul.f32 0.6931472, %v751_v15 }
 0x39d   :  { %v546_v17 = vsub.f32 %v539_v11, %v545_v16 }
 0x39f   :  { %547 = vst [vmem:[#allocation7] sm:$0xff] %v546_v17 }
 0x3a0   :  { %807 = shalt.err (!%p804_p6)
}
 0x3a1   :  { %s808_s25 = scalar_lea.hbm %s916_s5, 128 }
 0x3a2   :  { %p809_p7 = scmp.ne.s32.totalorder %s916_s5, %s808_s25  ;;  %p812_p8 = scmp.lt.u32.totalorder %s808_s25, %s916_s5 }
 0x3a4   :  { %p814_p9 = pnand %p812_p8, %p809_p7 }
 0x3a6   :  { %817 = shalt.err (!%p814_p9)
}
 0x3a7   :  { %557 = dma.vmem_to_hbm [thread:$0]  %s555_s22, 128, %s916_s5, [#allocation4]  }
 0x3a8   :  { %822 = dma.done.wait [#allocation4], 128  }
 0x3a9   :  { %823 = vsyncadd [#allocation4], 4294967168 }
 0x3aa   :  { %561 = vsyncpa [#allocation3], 1 }
 0x3ab   :  { %562 = vsyncpa [#allocation6], 1 }
 0x3ac   :  { %563 = vsyncpa [#allocation4], 1 }

</bundles_post_ra>
